<compile_context>
chip_gen: v6e
topology: v6e:2x2x1
jax: 0.10.0
libtpu: 0.0.40
codegen_flags: <defaults>
</compile_context>

<pallas_src>
import jax
import jax.numpy as jnp
from jax.experimental import pallas as pl
from jax.experimental.pallas import tpu as pltpu


_ROW_TILE_CAP = 8192                 # rows per grid step, upper bound
_VMEM_LIMIT_BYTES = 48 * 1024 * 1024  # > v5e/v6e defaults, < v7x physical


def _make_output_layer_kernel(features_output: int):
    """Builds the fused Linear -> ReLU -> Linear (+transpose) kernel body."""

    def kernel(x_ref, w1_ref, b1_ref, w2_ref, b2_ref, o_ref):
        # x_ref : (TILE_M, C)  flattened (batch, vertex) rows
        # w1_ref: (H, C)       liner1 weight, PyTorch (out, in) layout
        # b1_ref: (H, 1)
        # w2_ref: (H, 1) if F == 1 else (F, H)
        # b2_ref: (F, 1)
        # o_ref : (F, TILE_M)  transposed output block (lane dim = rows)
        #
        # h^T = W1 @ x^T, written as a direct contraction over the shared
        # feature axis so no standalone transpose/relayout of the activation
        # tile is emitted (Mosaic uses its transposed-operand matmul path).
        # TODO(synk): pass precision=lax.Precision.HIGHEST if strict fp32
        # parity with PyTorch is ever required (kernel is HBM-bound anyway).
        h_t = jax.lax.dot_general(
            w1_ref[...], x_ref[...],
            dimension_numbers=(((1,), (1,)), ((), ())),
            preferred_element_type=jnp.float32)
        h_t = jnp.maximum(h_t + b1_ref[...], 0.0)           # bias + ReLU (VPU)

        if features_output == 1:
            # F == 1: weighted sublane reduction on VPU/XLU — avoids driving
            # the MXU with a 1-row result.
            y_t = jnp.sum(h_t * w2_ref[...], axis=0, keepdims=True)
        else:
            # General F: (F, H) x (H, TILE_M) -> (F, TILE_M); lanes stay full.
            y_t = jax.lax.dot_general(
                w2_ref[...], h_t,
                dimension_numbers=(((1,), (0,)), ((), ())),
                preferred_element_type=jnp.float32)
        o_ref[...] = (y_t + b2_ref[...]).astype(o_ref.dtype)  # lane-dense store

    return kernel


def _plan_row_tiling(m: int, c: int, h: int):
    """Pick (tile_m, grid_steps, m_padded) for the flattened row axis.

    * tiny problems (< 256 rows): one full block (block == array dims, so the
      (8,128) rule is satisfied and padding/pipelining is pointless).
    * otherwise: big 128-multiple tiles (VMEM-budgeted, capped at 8192 rows),
      an even grid-step count >= 2 (v7x megacore balance), and the row count
      padded up so the grid tiles it exactly.
    """
    if m < 256:
        return m, 1, m

    c_pad = pl.cdiv(c, 128) * 128
    # Per-row f32 VMEM bytes: double-buffered lane-padded x tile + h_t temp
    # (+ headroom for the output / bias tiles).
    per_row_bytes = 4 * (2 * c_pad + h + 16)
    budget = 32 * 1024 * 1024
    cap = (budget // per_row_bytes) // 128 * 128
    cap = max(512, min(_ROW_TILE_CAP, cap))

    steps = max(2, pl.cdiv(m, cap))
    steps += steps % 2                       # even count: both v7x TCs busy
    tile_m = pl.cdiv(pl.cdiv(m, steps), 128) * 128
    return tile_m, steps, tile_m * steps


@jax.jit
def output_layer_forward(data, w1, b1, w2, b2):
    """Fused Linear -> ReLU -> Linear -> transpose(1, 2).

    data: (B, N, features_input) float32
    w1  : (hidden, features_input)      (PyTorch Linear layout)
    b1  : (hidden,)
    w2  : (features_output, hidden)
    b2  : (features_output,)
    returns: (B, features_output, N)
    """
    B, N, C = data.shape
    H = w1.shape[0]
    F = w2.shape[0]

    M = B * N                               # flattened (batch, vertex) rows
    tile_m, steps, m_pad = _plan_row_tiling(M, C, H)

    x2d = data.reshape(M, C)                # contiguous -> free metadata reshape
    if m_pad != M:
        # Pad rows so the grid tiles the array exactly; padded rows produce
        # finite garbage that is sliced off below.
        x2d = jnp.pad(x2d, ((0, m_pad - M), (0, 0)))

    b1_col = b1.reshape(H, 1)
    b2_col = b2.reshape(F, 1)
    if F == 1:
        w2_k = w2.reshape(H, 1)             # column for the in-kernel reduction
        w2_spec = pl.BlockSpec((H, 1), lambda i: (0, 0))
    else:
        w2_k = w2                           # keep PyTorch (F, H) layout
        w2_spec = pl.BlockSpec((F, H), lambda i: (0, 0))

    cost = pl.CostEstimate(
        flops=2 * M * C * H + 2 * M * H * F,
        transcendentals=0,
        bytes_accessed=4 * (M * C + H * C + F * H + H + F + F * M))

    out_flat = pl.pallas_call(
        _make_output_layer_kernel(F),
        out_shape=jax.ShapeDtypeStruct((F, m_pad), data.dtype),
        grid_spec=pltpu.PrefetchScalarGridSpec(
            num_scalar_prefetch=0,
            grid=(steps,),
            in_specs=[
                pl.BlockSpec((tile_m, C), lambda i: (i, 0)),   # streamed rows
                pl.BlockSpec((H, C), lambda i: (0, 0)),        # weights resident
                pl.BlockSpec((H, 1), lambda i: (0, 0)),
                w2_spec,
                pl.BlockSpec((F, 1), lambda i: (0, 0)),
            ],
            out_specs=pl.BlockSpec((F, tile_m), lambda i: (0, i)),
        ),
        compiler_params=pltpu.CompilerParams(
            dimension_semantics=("parallel",),   # independent row tiles
            vmem_limit_bytes=_VMEM_LIMIT_BYTES,
        ),
        cost_estimate=cost,
    )(x2d, w1, b1_col, w2_k, b2_col)

    if m_pad != M:
        out_flat = out_flat[:, :M]

    # torch.transpose(result, 1, 2): the kernel already produced the
    # transposed (F, B*N) layout, so for F == 1 this is a free reshape.
    if F == 1:
        return out_flat.reshape(B, 1, N)
    # TODO(synk): F > 1 keeps an XLA transpose; STSGCN's outputLayer always uses F == 1.
    return jnp.transpose(out_flat.reshape(F, B, N), (1, 0, 2))


def _run_case(key, B, N, C, H, F):
    k_x, k_w1, k_b1, k_w2, k_b2 = jax.random.split(key, 5)
    data = jax.random.normal(k_x, (B, N, C), dtype=jnp.float32)
    bound1 = 1.0 / (C ** 0.5)
    bound2 = 1.0 / (H ** 0.5)
    w1 = jax.random.uniform(k_w1, (H, C), minval=-bound1, maxval=bound1,
                            dtype=jnp.float32)
    b1 = jax.random.uniform(k_b1, (H,), minval=-bound1, maxval=bound1,
                            dtype=jnp.float32)
    w2 = jax.random.uniform(k_w2, (F, H), minval=-bound2, maxval=bound2,
                            dtype=jnp.float32)
    b2 = jax.random.uniform(k_b2, (F,), minval=-bound2, maxval=bound2,
                            dtype=jnp.float32)

    out = jax.block_until_ready(output_layer_forward(data, w1, b1, w2, b2))

    # Reference: same math as the PyTorch forward (Linear->ReLU->Linear->T).
    ref = jnp.maximum(data @ w1.T + b1, 0.0) @ w2.T + b2
    ref = jnp.transpose(ref, (0, 2, 1))
    assert out.shape == (B, F, N), (out.shape, (B, F, N))
    assert jnp.allclose(out, ref, atol=1e-4, rtol=1e-4)


if __name__ == "__main__":
    key = jax.random.PRNGKey(0)
    k1, k2, k3 = jax.random.split(key, 3)
    # Tiny shape consistent with the module (single-block path): B*N*C -> B*1*N.
    _run_case(k1, B=2, N=8, C=32, H=32, F=1)
    # Multi-step grid path (M = 1024 rows -> 2 parallel tiles of 512).
    _run_case(k2, B=8, N=128, C=48, H=64, F=1)
    # Row-padding path (M = 500 rows -> padded to 2 tiles of 256).
    _run_case(k3, B=5, N=100, C=48, H=64, F=1)
    print("KERNEL_OK")
</pallas_src>

<mosaic_0001>
module attributes {stable_mosaic.version = 11 : i64} {
  func.func @kernel(%arg0: i32, %arg1: memref<16x32xf32, #tpu.memory_space<vmem>>, %arg2: memref<32x32xf32, #tpu.memory_space<vmem>>, %arg3: memref<32x1xf32, #tpu.memory_space<vmem>>, %arg4: memref<32x1xf32, #tpu.memory_space<vmem>>, %arg5: memref<1x1xf32, #tpu.memory_space<vmem>>, %arg6: memref<1x16xf32, #tpu.memory_space<vmem>>) attributes {dimension_semantics = [#tpu.dimension_semantics<parallel>], iteration_bounds = array<i64: 1>, scalar_prefetch = 0 : i64, scratch_operands = 0 : i64, tpu.core_type = #tpu.core_type<tc>, window_params = [{transform_indices = @transform_0, window_bounds = array<i64: 16, 32>}, {pipeline_mode = #tpu.pipeline_mode<synchronous>, transform_indices = @transform_1, window_bounds = array<i64: 32, 32>}, {pipeline_mode = #tpu.pipeline_mode<synchronous>, transform_indices = @transform_2, window_bounds = array<i64: 32, 1>}, {pipeline_mode = #tpu.pipeline_mode<synchronous>, transform_indices = @transform_3, window_bounds = array<i64: 32, 1>}, {pipeline_mode = #tpu.pipeline_mode<synchronous>, transform_indices = @transform_4, window_bounds = array<i64: 1, 1>}, {transform_indices = @transform_5, window_bounds = array<i64: 1, 16>}]} {
    %c0 = arith.constant 0 : index
    %c0_0 = arith.constant 0 : index
    %0 = vector.load %arg2[%c0, %c0_0] : memref<32x32xf32, #tpu.memory_space<vmem>>, vector<32x32xf32>
    %c0_1 = arith.constant 0 : index
    %c0_2 = arith.constant 0 : index
    %1 = vector.load %arg1[%c0_1, %c0_2] : memref<16x32xf32, #tpu.memory_space<vmem>>, vector<16x32xf32>
    %cst = arith.constant dense<0.000000e+00> : vector<32x16xf32>
    %2 = tpu.matmul %0, %1, %cst {dimension_numbers = #tpu.dot_dimension_numbers<[1], [1], [0], [0], [0, 0, 1, 0], [], []>} : vector<32x32xf32>, vector<16x32xf32>, vector<32x16xf32> -> vector<32x16xf32>
    %c0_3 = arith.constant 0 : index
    %c0_4 = arith.constant 0 : index
    %3 = vector.load %arg3[%c0_3, %c0_4] : memref<32x1xf32, #tpu.memory_space<vmem>>, vector<32x1xf32>
    %4 = vector.broadcast %3 : vector<32x1xf32> to vector<32x16xf32>
    %5 = arith.addf %2, %4 : vector<32x16xf32>
    %cst_5 = arith.constant 0.000000e+00 : f32
    %6 = vector.broadcast %cst_5 : f32 to vector<32x16xf32>
    %7 = arith.maximumf %5, %6 : vector<32x16xf32>
    %c0_6 = arith.constant 0 : index
    %c0_7 = arith.constant 0 : index
    %8 = vector.load %arg4[%c0_6, %c0_7] : memref<32x1xf32, #tpu.memory_space<vmem>>, vector<32x1xf32>
    %9 = vector.broadcast %8 : vector<32x1xf32> to vector<32x16xf32>
    %10 = arith.mulf %7, %9 : vector<32x16xf32>
    %cst_8 = arith.constant dense<0.000000e+00> : vector<16xf32>
    %11 = vector.multi_reduction <add>, %10, %cst_8 [0] : vector<32x16xf32> to vector<16xf32>
    %12 = vector.shape_cast %11 : vector<16xf32> to vector<1x16xf32>
    %c0_9 = arith.constant 0 : index
    %c0_10 = arith.constant 0 : index
    %13 = vector.load %arg5[%c0_9, %c0_10] : memref<1x1xf32, #tpu.memory_space<vmem>>, vector<1x1xf32>
    %14 = vector.broadcast %13 : vector<1x1xf32> to vector<1x16xf32>
    %15 = arith.addf %12, %14 : vector<1x16xf32>
    %c0_11 = arith.constant 0 : index
    %c0_12 = arith.constant 0 : index
    %16 = vector.load %arg6[%c0_11, %c0_12] : memref<1x16xf32, #tpu.memory_space<vmem>>, vector<1x16xf32>
    tpu.vector_store %arg6[%c0_11, %c0_12], %15 {strides = array<i32>} : memref<1x16xf32, #tpu.memory_space<vmem>>, vector<1x16xf32>,
    return
  }
  func.func @transform_0(%arg0: i32) -> (i32, i32) {
    %c0_i32 = arith.constant 0 : i32
    %c0_i32_0 = arith.constant 0 : i32
    return %arg0, %c0_i32 : i32, i32
  }
  func.func @transform_1(%arg0: i32) -> (i32, i32) {
    %c0_i32 = arith.constant 0 : i32
    %c0_i32_0 = arith.constant 0 : i32
    %c0_i32_1 = arith.constant 0 : i32
    return %c0_i32, %c0_i32_0 : i32, i32
  }
  func.func @transform_2(%arg0: i32) -> (i32, i32) {
    %c0_i32 = arith.constant 0 : i32
    %c0_i32_0 = arith.constant 0 : i32
    %c0_i32_1 = arith.constant 0 : i32
    return %c0_i32, %c0_i32_0 : i32, i32
  }
  func.func @transform_3(%arg0: i32) -> (i32, i32) {
    %c0_i32 = arith.constant 0 : i32
    %c0_i32_0 = arith.constant 0 : i32
    %c0_i32_1 = arith.constant 0 : i32
    return %c0_i32, %c0_i32_0 : i32, i32
  }
  func.func @transform_4(%arg0: i32) -> (i32, i32) {
    %c0_i32 = arith.constant 0 : i32
    %c0_i32_0 = arith.constant 0 : i32
    %c0_i32_1 = arith.constant 0 : i32
    return %c0_i32, %c0_i32_0 : i32, i32
  }
  func.func @transform_5(%arg0: i32) -> (i32, i32) {
    %c0_i32 = arith.constant 0 : i32
    %c0_i32_0 = arith.constant 0 : i32
    return %c0_i32, %arg0 : i32, i32
  }
}

</mosaic_0001>

<bundles_post_ra>
// kernel: output_layer_forward.1
= control target key start
LH: loop header
LB: loop body
LE: loop exit
PB: predicated region body
PF: predicated region fallthrough
CT: control target
= control target key end

     0   :  { %vm52_vm0 = vcmask 261120   ;;  %v248_v2 = vmov 0   ;;  %vm188_vm1 = vcmask 130048   ;;  %v208_v47 = vlaneseq  ;;  %s339_s0 = inlined_call_operand.vmem [shape: f32[16,32], index: 0, kind: input, shape index: {}]   ;;  %s340_s1 = inlined_call_operand.vmem [shape: f32[32,32], index: 1, kind: input, shape index: {}]   ;;  %s341_s2 = inlined_call_operand.vmem [shape: f32[32,1], index: 2, kind: input, shape index: {}]   ;;  %s342_s4 = inlined_call_operand.<no memory space> [shape: f32[1,1], index: 4, kind: input, shape index: {}]   ;;  %s343_s3 = inlined_call_operand.vmem [shape: f32[32,1], index: 3, kind: input, shape index: {}]   ;;  %s344_s5 = inlined_call_operand.vmem [shape: f32[1,16], index: 5, kind: output, shape index: {}]  }
   0x1   :  { %v27_v0 = vld [vmem:[%s339_s0 + $0x8] sm:$0xff]  ;;  %v26_v1 = vld [vmem:[%s339_s0] sm:$0xff]  ;;  %246 = vset.pattern.permute.xlu0 %v248_v2  ;;  %247 = vset.pattern.permute.xlu1 %v248_v2  ;;  %v10_v3 = vstv %s342_s4  ;;  %v24_v5 = vld [vmem:[%s340_s1 + $0x10] sm:$0xff]  ;;  %vm213_vm2 = vcmask 122880  }
   0x2   :  { %231 = vmatprep.subr.msk.mxu0 %vm52_vm0, %v27_v0  ;;  %241 = vmatprep.subr.msk.mxu1 %vm52_vm0, %v27_v0  ;;  %v22_v4 = vld [vmem:[%s340_s1] sm:$0xff]  ;;  %11 = vst [vmem:[#allocation2] sm:$0x1] %v10_v3  ;;  %v30_v7 = vld [vmem:[%s341_s2 + $0x10] sm:$0xff]  ;;  %v23_v8 = vld [vmem:[%s340_s1 + $0x8] sm:$0xff]  ;;  %v209_v50 = vshrl.u32 %v208_v47, 7 }
   0x3   :  { %232 = vmatpush3.xpose.msk.msra.mxu0 %vm52_vm0, %v27_v0  ;;  %243 = vmatpush3.xpose.msk.msra.mxu1 %vm52_vm0, %v27_v0  ;;  %v28_v6 = vld [vmem:[%s341_s2] sm:$0xff]  ;;  %v25_v9 = vld [vmem:[%s340_s1 + $0x18] sm:$0xff]  ;;  %v29_v10 = vld [vmem:[%s341_s2 + $0x8] sm:$0xff] }
   0x4   :  { %233 = vmatprep.subr.msk.mxu0 %vm52_vm0, %v26_v1  ;;  %242 = vmatprep.subr.msk.mxu1 %vm52_vm0, %v26_v1  ;;  %v31_v11 = vld [vmem:[%s341_s2 + $0x18] sm:$0xff]  ;;  %v160_v12 = vld [vmem:[%s343_s3] sm:$0xff]  ;;  %v161_v13 = vld [vmem:[%s343_s3 + $0x8] sm:$0xff]  ;;  %v210_v53 = vsub.s32 0, %v209_v50 }
   0x5   :  { %235 = vmatprep.mubr.msk.f32.mxu0 %vm52_vm0, %v22_v4  ;;  %238 = vmatprep.mubr.msk.f32.mxu1 %vm52_vm0, %v24_v5  ;;  %v162_v14 = vld [vmem:[%s343_s3 + $0x10] sm:$0xff]  ;;  %v163_v15 = vld [vmem:[%s343_s3 + $0x18] sm:$0xff] }
   0x6   :  { %34 = vperm.xlu0 %246, %v28_v6   ;;  %44 = vperm.xlu1 %247, %v30_v7  }
   0x7   :  { %234 = vmatpush3.xpose.msk.msra.mxu0 %vm52_vm0, %v26_v1  ;;  %244 = vmatpush3.xpose.msk.msra.mxu1 %vm52_vm0, %v26_v1 }
   0x9   :  { %v202_v16 = vld [vmem:[#allocation2] sm:$0x1] }
   0xa   :  { %236 = vmatmul.mubr.msk.f32.vlgmr.msra.gmra.mxu0 %vm52_vm0, %v23_v8  ;;  %239 = vmatmul.mubr.msk.f32.vlgmr.msra.gmra.mxu1 %vm52_vm0, %v25_v9 }
   0xb   :  { %39 = vperm.xlu0 %246, %v29_v10   ;;  %49 = vperm.xlu1 %247, %v31_v11  }
   0xf   :  { %166 = vperm.xlu0 %246, %v160_v12   ;;  %171 = vperm.xlu1 %247, %v161_v13  }
  0x13   :  { %176 = vperm.xlu0 %246, %v162_v14   ;;  %181 = vperm.xlu1 %247, %v163_v15  }
  0x17   :  { %205 = vperm.xlu0 %246, %v202_v16  }
  0x81   :  { %v35_v17 = vpop.permute.xlu0 %34  ;;  %v45_v18 = vpop.permute.xlu1 %44 }
  0x86   :  { %v40_v19 = vpop.permute.xlu0 %39  ;;  %v50_v20 = vpop.permute.xlu1 %49 }
  0x8a   :  { %v167_v21 = vpop.permute.xlu0 %166  ;;  %v172_v24 = vpop.permute.xlu1 %171 }
  0x8e   :  { %v177_v36 = vpop.permute.xlu0 %176  ;;  %v182_v39 = vpop.permute.xlu1 %181 }
  0x92   :  { %v206_v55 = vpop.permute.xlu0 %205 }
  0x93   :  { %v211_v57 = vrot.slane %v206_v55, %v210_v53 }
  0xca   :  { %v237_v22 = vpop.f32.mrf.mxu0  ;;  %v240_v23 = vpop.f32.mrf.mxu1 }
  0xcb   :  { %v143_v25 = vadd.f32 %v237_v22, %v40_v19  ;;  %v153_v26 = vadd.f32 %v240_v23, %v50_v20 }
  0xcc   :  { %v137_v27 = vpop.f32.mrf.mxu0  ;;  %v147_v28 = vpop.f32.mrf.mxu1 }
  0xcd   :  { %v157_v29 = vmax.f32 %v143_v25, 0.0  ;;  %v138_v30 = vadd.f32 %v137_v27, %v35_v17  ;;  %v148_v31 = vadd.f32 %v147_v28, %v45_v18  ;;  %v159_v33 = vmax.f32 %v153_v26, 0.0 }
  0xcf   :  { %v185_v32 = vmul.f32 %v172_v24, %v157_v29  ;;  %v156_v34 = vmax.f32 %v138_v30, 0.0  ;;  %v158_v35 = vmax.f32 %v148_v31, 0.0  ;;  %v187_v41 = vmul.f32 %v182_v39, %v159_v33 }
  0xd1   :  { %v184_v37 = vmul.f32 %v167_v21, %v156_v34  ;;  %v186_v38 = vmul.f32 %v177_v36, %v158_v35  ;;  %v190_v40 = vsel %vm188_vm1, %v185_v32, 0.0  ;;  %v194_v46 = vsel %vm188_vm1, %v187_v41, 0.0 }
  0xd3   :  { %v189_v42 = vsel %vm188_vm1, %v184_v37, 0.0  ;;  %v192_v44 = vsel %vm188_vm1, %v186_v38, 0.0 }
  0xd4   :  { %v191_v43 = vadd.f32 %v190_v40, %v189_v42 }
  0xd6   :  { %v193_v45 = vadd.f32 %v192_v44, %v191_v43 }
  0xd8   :  { %v195_v48 = vadd.f32 %v194_v46, %v193_v45 }
  0xda   :  { %v196_v49 = vrot.slane %v195_v48, 4 }
  0xdc   :  { %v197_v51 = vadd.f32 %v196_v49, %v195_v48 }
  0xde   :  { %v198_v52 = vrot.slane %v197_v51, 2 }
  0xe0   :  { %v199_v54 = vadd.f32 %v198_v52, %v197_v51 }
  0xe2   :  { %v200_v56 = vrot.slane %v199_v54, 1 }
  0xe4   :  { %v201_v58 = vadd.f32 %v200_v56, %v199_v54 }
  0xe6   :  { %v212_v59 = vadd.f32 %v211_v57, %v201_v58 }
  0xe8   :  { %214 = vst.msk [vmem:[%s344_s5] sm:$0x1] %vm213_vm2, %v212_v59 }

</bundles_post_ra>
